<compile_context>
chip_gen: v7x
topology: tpu7x:2x2x1
jax: 0.10.0
libtpu: 0.0.40
codegen_flags: <defaults>
</compile_context>

<pallas_src>
import functools

import jax
import jax.numpy as jnp
from jax.experimental import pallas as pl
from jax.experimental.pallas import tpu as pltpu


def _out_seg_kernel(c_in, c_out, w_ref, b_ref, x_ref, o_ref):
    """Pointwise channel mix + bias + sigmoid on one spatial tile.

    w_ref: SMEM (c_out, c_in) f32      b_ref: SMEM (c_out,) f32
    x_ref: VMEM (1, c_in, *spatial)    o_ref: VMEM (1, c_out, *spatial)
    Works for both the 2-D spatial layout (1, C, R, L) and the 1-D fallback
    layout (1, C, S).
    """
    trail = (slice(None),) * (len(x_ref.shape) - 2)
    # Hoist: load + upcast each input-channel slab exactly once.
    xs = [
        x_ref[(slice(None), ci) + trail].astype(jnp.float32)
        for ci in range(c_in)
    ]
    for co in range(c_out):
        acc = xs[0] * w_ref[co, 0]
        for ci in range(1, c_in):
            acc = acc + xs[ci] * w_ref[co, ci]
        y = jax.nn.sigmoid(acc + b_ref[co])
        o_ref[(slice(None), co) + trail] = y.astype(o_ref.dtype)


def _pick_lane_width(s, max_l=1024):
    """Largest multiple of 128 (<= max_l) that divides s; 0 if none exists."""
    best = 0
    l = 128
    while l <= min(s, max_l):
        if s % l == 0:
            best = l
        l += 128
    return best


@functools.partial(jax.jit, static_argnames=("tile_elems",))
def out_seg_forward(x, weight, bias, tile_elems=131072):
    """x: (N, C_in, D, H, W); weight: (C_out, C_in, 1, 1, 1); bias: (C_out,)."""
    n, c_in, d, h, w = x.shape
    c_out = weight.shape[0]
    s = d * h * w

    w_mat = weight.reshape(c_out, c_in).astype(jnp.float32)
    b_vec = bias.reshape(c_out).astype(jnp.float32)
    kernel = functools.partial(_out_seg_kernel, c_in, c_out)
    cparams = pltpu.CompilerParams(
        dimension_semantics=("parallel", "parallel")
    )
    smem_spec = pl.BlockSpec(memory_space=pltpu.MemorySpace.SMEM)

    lane = _pick_lane_width(s)
    if lane > 0:
        # Preferred path: spatial folded onto sublanes AND lanes -> full
        # (8,128) vregs, unmasked stores, minimal VMEM padding.
        r_total = s // lane
        desired_r = max(1, tile_elems // lane)
        if r_total <= desired_r:
            tr = r_total                       # full extent (always legal)
        else:
            tr = max(8, (desired_r // 8) * 8)  # sublane-aligned tile
        x_view = x.reshape(n, c_in, r_total, lane)   # free reshape of NCDHW
        grid = (n, pl.cdiv(r_total, tr))

        out = pl.pallas_call(
            kernel,
            out_shape=jax.ShapeDtypeStruct((n, c_out, r_total, lane), x.dtype),
            grid_spec=pltpu.PrefetchScalarGridSpec(
                num_scalar_prefetch=0,
                grid=grid,
                in_specs=[
                    smem_spec,  # weights (a few scalars) in SMEM
                    smem_spec,  # bias in SMEM
                    pl.BlockSpec(
                        (1, c_in, tr, lane), lambda ni, ri: (ni, 0, ri, 0)
                    ),
                ],
                out_specs=pl.BlockSpec(
                    (1, c_out, tr, lane), lambda ni, ri: (ni, 0, ri, 0)
                ),
            ),
            compiler_params=cparams,
        )(w_mat, b_vec, x_view)
        return out.reshape(n, c_out, d, h, w)

    # Fallback path: no multiple-of-128 divides S.  Channels on sublanes,
    # spatial (full extent or a 128-multiple tile) on lanes.
    ts = s if s <= tile_elems else max(128, (tile_elems // 128) * 128)
    x_flat = x.reshape(n, c_in, s)
    grid = (n, pl.cdiv(s, ts))

    out_flat = pl.pallas_call(
        kernel,
        out_shape=jax.ShapeDtypeStruct((n, c_out, s), x.dtype),
        grid_spec=pltpu.PrefetchScalarGridSpec(
            num_scalar_prefetch=0,
            grid=grid,
            in_specs=[
                smem_spec,
                smem_spec,
                pl.BlockSpec((1, c_in, ts), lambda ni, si: (ni, 0, si)),
            ],
            out_specs=pl.BlockSpec((1, c_out, ts), lambda ni, si: (ni, 0, si)),
        ),
        compiler_params=cparams,
    )(w_mat, b_vec, x_flat)
    return out_flat.reshape(n, c_out, d, h, w)


def _init_params(key, in_channels, out_channels):
    # Deterministic init mimicking nn.Conv3d defaults (kaiming-uniform-ish):
    # fan_in = in_channels * 1 * 1 * 1, bound = 1/sqrt(fan_in)
    k_w, k_b = jax.random.split(key)
    bound = 1.0 / jnp.sqrt(jnp.float32(in_channels))
    weight = jax.random.uniform(
        k_w, (out_channels, in_channels, 1, 1, 1), jnp.float32, -bound, bound
    )
    bias = jax.random.uniform(k_b, (out_channels,), jnp.float32, -bound, bound)
    return weight, bias


def _reference(x, weight, bias):
    c_out, c_in = weight.shape[0], weight.shape[1]
    w_mat = weight.reshape(c_out, c_in)
    lin = jnp.einsum(
        "ncdhw,oc->nodhw", x, w_mat, precision=jax.lax.Precision.HIGHEST
    )
    return jax.nn.sigmoid(lin + bias[None, :, None, None, None])


if __name__ == "__main__":
    key = jax.random.PRNGKey(0)
    k_x, k_p, k_x2 = jax.random.split(key, 3)

    N, C_IN, C_OUT = 2, 4, 3
    weight, bias = _init_params(k_p, C_IN, C_OUT)

    # Main (2-D spatial layout) path: S = 4*8*8 = 256 is a multiple of 128.
    x = jax.random.normal(k_x, (N, C_IN, 4, 8, 8), jnp.float32)
    out = jax.block_until_ready(out_seg_forward(x, weight, bias))
    ref = _reference(x, weight, bias)
    assert out.shape == (N, C_OUT, 4, 8, 8)
    assert jnp.allclose(out, ref, atol=1e-5, rtol=1e-5)

    # Fallback (1-D spatial layout) path: S = 3*5*7 = 105, no 128-divisor.
    x2 = jax.random.normal(k_x2, (N, C_IN, 3, 5, 7), jnp.float32)
    out2 = jax.block_until_ready(out_seg_forward(x2, weight, bias))
    ref2 = _reference(x2, weight, bias)
    assert out2.shape == (N, C_OUT, 3, 5, 7)
    assert jnp.allclose(out2, ref2, atol=1e-5, rtol=1e-5)

    print("KERNEL_OK")
</pallas_src>

<mosaic_0001>
module attributes {stable_mosaic.version = 11 : i64} {
  func.func @_out_seg_kernel(%arg0: i32, %arg1: i32, %arg2: memref<3x4xf32, #tpu.memory_space<smem>>, %arg3: memref<3xf32, #tpu.memory_space<smem>>, %arg4: memref<1x4x1x256xf32, #tpu.memory_space<vmem>>, %arg5: memref<1x3x1x256xf32, #tpu.memory_space<vmem>>) attributes {dimension_semantics = [#tpu.dimension_semantics<parallel>, #tpu.dimension_semantics<parallel>], iteration_bounds = array<i64: 2, 1>, scalar_prefetch = 0 : i64, scratch_operands = 0 : i64, tpu.core_type = #tpu.core_type<tc>, window_params = [{transform_indices = @transform_0, window_bounds = array<i64: 3, 4>}, {transform_indices = @transform_1, window_bounds = array<i64: 3>}, {transform_indices = @transform_2, window_bounds = array<i64: 1, 4, 1, 256>}, {transform_indices = @transform_3, window_bounds = array<i64: 1, 3, 1, 256>}]} {
    %c0 = arith.constant 0 : index
    %c0_0 = arith.constant 0 : index
    %c0_1 = arith.constant 0 : index
    %c0_2 = arith.constant 0 : index
    %0 = vector.load %arg4[%c0, %c0_0, %c0_1, %c0_2] : memref<1x4x1x256xf32, #tpu.memory_space<vmem>>, vector<1x1x1x256xf32>
    %1 = vector.shape_cast %0 : vector<1x1x1x256xf32> to vector<1x1x256xf32>
    %c0_3 = arith.constant 0 : index
    %c1 = arith.constant 1 : index
    %c0_4 = arith.constant 0 : index
    %c0_5 = arith.constant 0 : index
    %2 = vector.load %arg4[%c0_3, %c1, %c0_4, %c0_5] : memref<1x4x1x256xf32, #tpu.memory_space<vmem>>, vector<1x1x1x256xf32>
    %3 = vector.shape_cast %2 : vector<1x1x1x256xf32> to vector<1x1x256xf32>
    %c0_6 = arith.constant 0 : index
    %c2 = arith.constant 2 : index
    %c0_7 = arith.constant 0 : index
    %c0_8 = arith.constant 0 : index
    %4 = vector.load %arg4[%c0_6, %c2, %c0_7, %c0_8] : memref<1x4x1x256xf32, #tpu.memory_space<vmem>>, vector<1x1x1x256xf32>
    %5 = vector.shape_cast %4 : vector<1x1x1x256xf32> to vector<1x1x256xf32>
    %c0_9 = arith.constant 0 : index
    %c3 = arith.constant 3 : index
    %c0_10 = arith.constant 0 : index
    %c0_11 = arith.constant 0 : index
    %6 = vector.load %arg4[%c0_9, %c3, %c0_10, %c0_11] : memref<1x4x1x256xf32, #tpu.memory_space<vmem>>, vector<1x1x1x256xf32>
    %7 = vector.shape_cast %6 : vector<1x1x1x256xf32> to vector<1x1x256xf32>
    %c0_12 = arith.constant 0 : index
    %c0_13 = arith.constant 0 : index
    %8 = memref.load %arg2[%c0_12, %c0_13] : memref<3x4xf32, #tpu.memory_space<smem>>
    %9 = vector.broadcast %8 : f32 to vector<1x1x256xf32>
    %10 = arith.mulf %1, %9 : vector<1x1x256xf32>
    %c0_14 = arith.constant 0 : index
    %c1_15 = arith.constant 1 : index
    %11 = memref.load %arg2[%c0_14, %c1_15] : memref<3x4xf32, #tpu.memory_space<smem>>
    %12 = vector.broadcast %11 : f32 to vector<1x1x256xf32>
    %13 = arith.mulf %3, %12 : vector<1x1x256xf32>
    %14 = arith.addf %10, %13 : vector<1x1x256xf32>
    %c0_16 = arith.constant 0 : index
    %c2_17 = arith.constant 2 : index
    %15 = memref.load %arg2[%c0_16, %c2_17] : memref<3x4xf32, #tpu.memory_space<smem>>
    %16 = vector.broadcast %15 : f32 to vector<1x1x256xf32>
    %17 = arith.mulf %5, %16 : vector<1x1x256xf32>
    %18 = arith.addf %14, %17 : vector<1x1x256xf32>
    %c0_18 = arith.constant 0 : index
    %c3_19 = arith.constant 3 : index
    %19 = memref.load %arg2[%c0_18, %c3_19] : memref<3x4xf32, #tpu.memory_space<smem>>
    %20 = vector.broadcast %19 : f32 to vector<1x1x256xf32>
    %21 = arith.mulf %7, %20 : vector<1x1x256xf32>
    %22 = arith.addf %18, %21 : vector<1x1x256xf32>
    %c0_20 = arith.constant 0 : index
    %23 = memref.load %arg3[%c0_20] : memref<3xf32, #tpu.memory_space<smem>>
    %24 = vector.broadcast %23 : f32 to vector<1x1x256xf32>
    %25 = arith.addf %22, %24 : vector<1x1x256xf32>
    %26 = arith.negf %25 : vector<1x1x256xf32>
    %27 = math.exp %26 : vector<1x1x256xf32>
    %cst = arith.constant 1.000000e+00 : f32
    %28 = vector.broadcast %cst : f32 to vector<1x1x256xf32>
    %29 = arith.addf %28, %27 : vector<1x1x256xf32>
    %30 = arith.divf %28, %29 : vector<1x1x256xf32>
    %c0_21 = arith.constant 0 : index
    %c0_22 = arith.constant 0 : index
    %c0_23 = arith.constant 0 : index
    %c0_24 = arith.constant 0 : index
    %31 = vector.load %arg5[%c0_21, %c0_22, %c0_23, %c0_24] : memref<1x3x1x256xf32, #tpu.memory_space<vmem>>, vector<1x1x1x256xf32>
    %32 = vector.shape_cast %31 : vector<1x1x1x256xf32> to vector<1x1x256xf32>
    %33 = vector.shape_cast %30 : vector<1x1x256xf32> to vector<1x1x1x256xf32>
    tpu.vector_store %arg5[%c0_21, %c0_22, %c0_23, %c0_24], %33 {strides = array<i32>} : memref<1x3x1x256xf32, #tpu.memory_space<vmem>>, vector<1x1x1x256xf32>,
    %c1_25 = arith.constant 1 : index
    %c0_26 = arith.constant 0 : index
    %34 = memref.load %arg2[%c1_25, %c0_26] : memref<3x4xf32, #tpu.memory_space<smem>>
    %35 = vector.broadcast %34 : f32 to vector<1x1x256xf32>
    %36 = arith.mulf %1, %35 : vector<1x1x256xf32>
    %c1_27 = arith.constant 1 : index
    %c1_28 = arith.constant 1 : index
    %37 = memref.load %arg2[%c1_27, %c1_28] : memref<3x4xf32, #tpu.memory_space<smem>>
    %38 = vector.broadcast %37 : f32 to vector<1x1x256xf32>
    %39 = arith.mulf %3, %38 : vector<1x1x256xf32>
    %40 = arith.addf %36, %39 : vector<1x1x256xf32>
    %c1_29 = arith.constant 1 : index
    %c2_30 = arith.constant 2 : index
    %41 = memref.load %arg2[%c1_29, %c2_30] : memref<3x4xf32, #tpu.memory_space<smem>>
    %42 = vector.broadcast %41 : f32 to vector<1x1x256xf32>
    %43 = arith.mulf %5, %42 : vector<1x1x256xf32>
    %44 = arith.addf %40, %43 : vector<1x1x256xf32>
    %c1_31 = arith.constant 1 : index
    %c3_32 = arith.constant 3 : index
    %45 = memref.load %arg2[%c1_31, %c3_32] : memref<3x4xf32, #tpu.memory_space<smem>>
    %46 = vector.broadcast %45 : f32 to vector<1x1x256xf32>
    %47 = arith.mulf %7, %46 : vector<1x1x256xf32>
    %48 = arith.addf %44, %47 : vector<1x1x256xf32>
    %c1_33 = arith.constant 1 : index
    %49 = memref.load %arg3[%c1_33] : memref<3xf32, #tpu.memory_space<smem>>
    %50 = vector.broadcast %49 : f32 to vector<1x1x256xf32>
    %51 = arith.addf %48, %50 : vector<1x1x256xf32>
    %52 = arith.negf %51 : vector<1x1x256xf32>
    %53 = math.exp %52 : vector<1x1x256xf32>
    %cst_34 = arith.constant 1.000000e+00 : f32
    %54 = vector.broadcast %cst_34 : f32 to vector<1x1x256xf32>
    %55 = arith.addf %54, %53 : vector<1x1x256xf32>
    %56 = arith.divf %54, %55 : vector<1x1x256xf32>
    %c0_35 = arith.constant 0 : index
    %c1_36 = arith.constant 1 : index
    %c0_37 = arith.constant 0 : index
    %c0_38 = arith.constant 0 : index
    %57 = vector.load %arg5[%c0_35, %c1_36, %c0_37, %c0_38] : memref<1x3x1x256xf32, #tpu.memory_space<vmem>>, vector<1x1x1x256xf32>
    %58 = vector.shape_cast %57 : vector<1x1x1x256xf32> to vector<1x1x256xf32>
    %59 = vector.shape_cast %56 : vector<1x1x256xf32> to vector<1x1x1x256xf32>
    tpu.vector_store %arg5[%c0_35, %c1_36, %c0_37, %c0_38], %59 {strides = array<i32>} : memref<1x3x1x256xf32, #tpu.memory_space<vmem>>, vector<1x1x1x256xf32>,
    %c2_39 = arith.constant 2 : index
    %c0_40 = arith.constant 0 : index
    %60 = memref.load %arg2[%c2_39, %c0_40] : memref<3x4xf32, #tpu.memory_space<smem>>
    %61 = vector.broadcast %60 : f32 to vector<1x1x256xf32>
    %62 = arith.mulf %1, %61 : vector<1x1x256xf32>
    %c2_41 = arith.constant 2 : index
    %c1_42 = arith.constant 1 : index
    %63 = memref.load %arg2[%c2_41, %c1_42] : memref<3x4xf32, #tpu.memory_space<smem>>
    %64 = vector.broadcast %63 : f32 to vector<1x1x256xf32>
    %65 = arith.mulf %3, %64 : vector<1x1x256xf32>
    %66 = arith.addf %62, %65 : vector<1x1x256xf32>
    %c2_43 = arith.constant 2 : index
    %c2_44 = arith.constant 2 : index
    %67 = memref.load %arg2[%c2_43, %c2_44] : memref<3x4xf32, #tpu.memory_space<smem>>
    %68 = vector.broadcast %67 : f32 to vector<1x1x256xf32>
    %69 = arith.mulf %5, %68 : vector<1x1x256xf32>
    %70 = arith.addf %66, %69 : vector<1x1x256xf32>
    %c2_45 = arith.constant 2 : index
    %c3_46 = arith.constant 3 : index
    %71 = memref.load %arg2[%c2_45, %c3_46] : memref<3x4xf32, #tpu.memory_space<smem>>
    %72 = vector.broadcast %71 : f32 to vector<1x1x256xf32>
    %73 = arith.mulf %7, %72 : vector<1x1x256xf32>
    %74 = arith.addf %70, %73 : vector<1x1x256xf32>
    %c2_47 = arith.constant 2 : index
    %75 = memref.load %arg3[%c2_47] : memref<3xf32, #tpu.memory_space<smem>>
    %76 = vector.broadcast %75 : f32 to vector<1x1x256xf32>
    %77 = arith.addf %74, %76 : vector<1x1x256xf32>
    %78 = arith.negf %77 : vector<1x1x256xf32>
    %79 = math.exp %78 : vector<1x1x256xf32>
    %cst_48 = arith.constant 1.000000e+00 : f32
    %80 = vector.broadcast %cst_48 : f32 to vector<1x1x256xf32>
    %81 = arith.addf %80, %79 : vector<1x1x256xf32>
    %82 = arith.divf %80, %81 : vector<1x1x256xf32>
    %c0_49 = arith.constant 0 : index
    %c2_50 = arith.constant 2 : index
    %c0_51 = arith.constant 0 : index
    %c0_52 = arith.constant 0 : index
    %83 = vector.load %arg5[%c0_49, %c2_50, %c0_51, %c0_52] : memref<1x3x1x256xf32, #tpu.memory_space<vmem>>, vector<1x1x1x256xf32>
    %84 = vector.shape_cast %83 : vector<1x1x1x256xf32> to vector<1x1x256xf32>
    %85 = vector.shape_cast %82 : vector<1x1x256xf32> to vector<1x1x1x256xf32>
    tpu.vector_store %arg5[%c0_49, %c2_50, %c0_51, %c0_52], %85 {strides = array<i32>} : memref<1x3x1x256xf32, #tpu.memory_space<vmem>>, vector<1x1x1x256xf32>,
    return
  }
  func.func @transform_0(%arg0: i32, %arg1: i32) -> (i32, i32) {
    %c0_i32 = arith.constant 0 : i32
    %c0_i32_0 = arith.constant 0 : i32
    %c0_i32_1 = arith.constant 0 : i32
    return %c0_i32, %c0_i32_0 : i32, i32
  }
  func.func @transform_1(%arg0: i32, %arg1: i32) -> i32 {
    %c0_i32 = arith.constant 0 : i32
    %c0_i32_0 = arith.constant 0 : i32
    return %c0_i32 : i32
  }
  func.func @transform_2(%arg0: i32, %arg1: i32) -> (i32, i32, i32, i32) {
    %c0_i32 = arith.constant 0 : i32
    %c0_i32_0 = arith.constant 0 : i32
    %c0_i32_1 = arith.constant 0 : i32
    return %arg0, %c0_i32, %arg1, %c0_i32_0 : i32, i32, i32, i32
  }
  func.func @transform_3(%arg0: i32, %arg1: i32) -> (i32, i32, i32, i32) {
    %c0_i32 = arith.constant 0 : i32
    %c0_i32_0 = arith.constant 0 : i32
    %c0_i32_1 = arith.constant 0 : i32
    return %arg0, %c0_i32, %arg1, %c0_i32_0 : i32, i32, i32, i32
  }
}

</mosaic_0001>

<bundles_post_ra>
// kernel: out_seg_forward.1
= control target key start
LH: loop header
LB: loop body
LE: loop exit
PB: predicated region body
PF: predicated region fallthrough
CT: control target
= control target key end

     0   :  { %8 = vsyncpa [#allocation3], 0  ;;  %s684_s0 = inlined_call_operand.vmem [shape: f32[3,4], index: 0, kind: input, shape index: {}]   ;;  %s685_s1 = inlined_call_operand.vmem [shape: f32[3], index: 1, kind: input, shape index: {}]   ;;  %s686_s2 = inlined_call_operand.vmem [shape: f32[2,4,1,256], index: 2, kind: input, shape index: {}]   ;;  %s687_s3 = inlined_call_operand.vmem [shape: f32[2,3,1,256], index: 3, kind: output, shape index: {}]  }
   0x1   :  { %9 = vsyncpa [#allocation5], 0  ;;  %s598_s12 = smov 0   ;;  %s600_s13 = smov 0  }
   0x2   :  { %s602_s14 = smov 0  }
   0x3 LB: > { %s423_s15 = sadd.s32 4294967295, %s574_s14   ;;  %s27_s16 = sadd.s32 1, %s570_s13  ;;  %s574_s14 = sphi %s602_s14, %s15_s14   ;;  %s570_s13 = sphi %s600_s13, %s697_s13   ;;  %s566_s12 = sphi %s598_s12, %s696_s12  }
   0x4   : > { %p29_p0 = scmp.ge.s32.totalorder %s27_s16, 2  ;;  %p425_p1 = scmp.ge.s32.totalorder %s574_s14, 1 }
   0x5   : > { %p130_p2 = scmp.lt.s32.totalorder %s574_s14, 3  ;;  %p623_p4 = scmp.eq.s32.totalorder %s423_s15, 0 }
   0x6   : > { %s699_s16 = smov (%p29_p0, %s27_s16), 0  ;;  %s143_s21 = sshll.u32 %s684_s0, 4  ;;  %s144_s21 = int_to_ptr.vmem [resolvable:$true] %s143_s21 }
   0x7   : > { %p619_p3 = pnand %p425_p1, %p130_p2  ;;  %s154_s24 = sshll.u32 %s685_s1, 4  ;;  %s155_s24 = int_to_ptr.vmem [resolvable:$true] %s154_s24 }
   0x8   : > { %s692_s18 = scalar_select %p623_p4, 1, 0 }
   0x9   : > { %s691_s17 = scalar_select %p619_p3, 1, 0 }
   0xa   : > { %p465_p5 = pneg %p619_p3  ;;  %s514_s26 = scalar_lea.vmem %s144_s21, 64 }
   0xb   : > { %p515_p7 = scmp.ne.s32.totalorder %s144_s21, %s514_s26  ;;  %p522_p11 = scmp.lt.s32.totalorder %s144_s21, %s144_s21 }
   0xc   : > { %p637_p6 = pnand %p623_p4, %p465_p5  ;;  %p523_p12 = scmp.lt.s32.totalorder %s514_s26, %s514_s26 }
   0xe   : > { %p516_p8 = pneg %p637_p6  ;;  %p524_p13 = por %p523_p12, %p522_p11 }
  0x10   : > { %p517_p9 = pnand %p516_p8, %p515_p7 }
  0x12   : > { %p518_p10 = pneg %p517_p9 }
  0x14   : > { %p525_p0 = pnand %p524_p13, %p518_p10 }
  0x16   : > { %528 = shalt.err (!%p525_p0)
}
  0x17   : > { %s576_s27 = smov [#allocation2]   ;;  %s529_s28 = scalar_lea.vmem %s155_s24, 16 }
  0x18   : > { %468 = dma.vmem_to_smem (!%p637_p6), %s144_s21, 64, %s576_s27, [#allocation3]  }
  0x19   : > { %p530_p1 = scmp.ne.s32.totalorder %s155_s24, %s529_s28  ;;  %p537_p4 = scmp.lt.s32.totalorder %s155_s24, %s155_s24 }
  0x1a   : > { %p538_p3 = scmp.lt.s32.totalorder %s529_s28, %s529_s28 }
  0x1b   : > { %p532_p2 = pnand %p530_p1, %p516_p8 }
  0x1c   : > { %p539_p7 = por %p538_p3, %p537_p4 }
  0x1d   : > { %p533_p5 = pneg %p532_p2 }
  0x1f   : > { %p540_p9 = pnand %p539_p7, %p533_p5 }
  0x21   : > { %543 = shalt.err (!%p540_p9)
}
  0x22   : > { %s577_s29 = smov [#allocation4]   ;;  %p694_p10 = scmp.ne.s32.totalorder %s691_s17, 0 }
  0x23   : > { %471 = dma.vmem_to_smem (!%p637_p6), %s155_s24, 16, %s577_s29, [#allocation5]  }
  0x24   : > { %178 = sbr.rel (%p694_p10) target bundleno = 100 (0x64), region = 32  ;;  %p695_p11 = scmp.ne.s32.totalorder (!%p694_p10), %s692_s18, 0 }
  0x2b   : > { %557 = dma.done.wait (%p695_p11), [#allocation3], 64  }
  0x2c   : > { %559 = vsyncadd (%p695_p11), [#allocation3], 4294967232 }
  0x2d   : > { %561 = dma.done.wait (%p695_p11), [#allocation5], 16  }
  0x2e   : > { %563 = vsyncadd (%p695_p11), [#allocation5], 4294967280 }
  0x2f   : > { %188 = sfence }
  0x30   : > { %p213_p3 = scmp.lt.s32.totalorder %s566_s12, 1  ;;  %s236_s30 = sld [smem:[#allocation2]]  ;;  %v260_v49 = vlaneseq }
  0x31   : > { %s436_s4 = sld [smem:[#allocation2 + $0x1]]  ;;  %s437_s5 = sld [smem:[#allocation2 + $0x2]] }
  0x32   : > { %s701_s12 = smov (!%p213_p3, %s566_s12), 1  ;;  %s438_s6 = sld [smem:[#allocation2 + $0x3]]  ;;  %vm262_vm0 = vcmp.lt.s32.totalorder %v260_v49, 256 }
  0x33   : > { %s432_s7 = sshll.u32 %s701_s12, 3  ;;  %s662_s8 = sld [smem:[#allocation4]] }
  0x34   : > { %s220_s11 = scalar_lea.vmem %s686_s2, %s432_s7  ;;  %s440_s15 = sld [smem:[#allocation2 + $0x80]] }
  0x35   : > { %v229_v0 = vld [vmem:[%s220_s11] sm:$0x3]  ;;  %v433_v1 = vld [vmem:[%s220_s11 + $0x2] sm:$0x3]  ;;  %v434_v2 = vld [vmem:[%s220_s11 + $0x4] sm:$0x3] }
  0x36   : > { %v237_v3 = vstv %s236_s30  ;;  %v435_v4 = vld [vmem:[%s220_s11 + $0x6] sm:$0x3]  ;;  %s441_s17 = sld [smem:[#allocation2 + $0x81]]  ;;  %s442_s18 = sld [smem:[#allocation2 + $0x82]] }
  0x37   : > { %v238_v5 = vmul.f32 %v237_v3, %v229_v0  ;;  %v240_v6 = vstv %s436_s4  ;;  %v244_v7 = vstv %s437_s5  ;;  %s443_s19 = sld [smem:[#allocation2 + $0x83]]  ;;  %s447_s20 = sld [smem:[#allocation2 + $0x100]] }
  0x38   : > { %v241_v8 = vmul.f32 %v433_v1, %v240_v6  ;;  %v245_v9 = vmul.f32 %v434_v2, %v244_v7  ;;  %v248_v10 = vstv %s438_s6  ;;  %s448_s21 = sld [smem:[#allocation2 + $0x101]]  ;;  %s449_s22 = sld [smem:[#allocation2 + $0x102]] }
  0x39   : > { %v249_v12 = vmul.f32 %v435_v4, %v248_v10  ;;  %s450_s23 = sld [smem:[#allocation2 + $0x103]]  ;;  %s667_s24 = sld [smem:[#allocation4 + $0x1]]  ;;  %v252_v16 = vstv %s662_s8 }
  0x3a   : > { %v242_v11 = vadd.f32 %v241_v8, %v238_v5  ;;  %v266_v13 = vstv %s440_s15  ;;  %s451_s25 = sld [smem:[#allocation4 + $0x2]]  ;;  %s456_s26 = smul.u32 6, %s701_s12 }
  0x3b   : > { %v267_v15 = vmul.f32 %v266_v13, %v229_v0 }
  0x3c   : > { %v246_v14 = vadd.f32 %v245_v9, %v242_v11  ;;  %v269_v17 = vstv %s441_s17  ;;  %v273_v18 = vstv %s442_s18  ;;  %s228_s29 = scalar_lea.vmem %s687_s3, %s456_s26 }
  0x3d   : > { %v270_v20 = vmul.f32 %v433_v1, %v269_v17  ;;  %v274_v21 = vmul.f32 %v434_v2, %v273_v18  ;;  %v277_v22 = vstv %s443_s19  ;;  %v292_v24 = vstv %s447_s20 }
  0x3e   : > { %v250_v19 = vadd.f32 %v249_v12, %v246_v14  ;;  %v278_v23 = vmul.f32 %v435_v4, %v277_v22  ;;  %v295_v25 = vstv %s448_s21  ;;  %v293_v28 = vmul.f32 %v292_v24, %v229_v0 }
  0x3f   : > { %v271_v27 = vadd.f32 %v270_v20, %v267_v15  ;;  %v296_v29 = vmul.f32 %v433_v1, %v295_v25  ;;  %v299_v30 = vstv %s449_s22  ;;  %v303_v31 = vstv %s450_s23 }
  0x40   : > { %v253_v26 = vadd.f32 %v252_v16, %v250_v19  ;;  %v300_v35 = vmul.f32 %v434_v2, %v299_v30  ;;  %v281_v36 = vstv %s667_s24  ;;  %v304_v37 = vmul.f32 %v435_v4, %v303_v31 }
  0x41   : > { %v275_v33 = vadd.f32 %v274_v21, %v271_v27  ;;  %v297_v34 = vadd.f32 %v296_v29, %v293_v28  ;;  %v307_v40 = vstv %s451_s25 }
  0x42   : > { %v439_v32 = vmul.f32 -1.442695, %v253_v26 }
  0x43   : > { %v279_v38 = vadd.f32 %v278_v23, %v275_v33  ;;  %v301_v39 = vadd.f32 %v300_v35, %v297_v34 }
  0x44   : > { %502 = vpow2.f32 %v439_v32 }
  0x45   : > { %v282_v41 = vadd.f32 %v281_v36, %v279_v38  ;;  %v305_v42 = vadd.f32 %v304_v37, %v301_v39 }
  0x47   : > { %v445_v43 = vmul.f32 -1.442695, %v282_v41  ;;  %v308_v44 = vadd.f32 %v307_v40, %v305_v42 }
  0x49   : > { %504 = vpow2.f32 %v445_v43  ;;  %v452_v45 = vmul.f32 -1.442695, %v308_v44 }
  0x4b   : > { %506 = vpow2.f32 %v452_v45 }
  0x4e   : > { %v503_v46 = vpop.eup %502 }
  0x4f   : > { %v257_v47 = vadd.f32 1.0, %v503_v46 }
  0x51   : > { %508 = vrcp.f32 %v257_v47 }
  0x53   : > { %v505_v48 = vpop.eup %504 }
  0x54   : > { %v286_v50 = vadd.f32 1.0, %v505_v48 }
  0x55   : > { %v507_v51 = vpop.eup %506 }
  0x56   : > { %510 = vrcp.f32 %v286_v50  ;;  %v312_v52 = vadd.f32 1.0, %v507_v51 }
  0x58   : > { %512 = vrcp.f32 %v312_v52 }
  0x5b   : > { %v509_v53 = vpop.eup %508 }
  0x5c   : > { %264 = vst.msk [vmem:[%s228_s29] sm:$0x3] %vm262_vm0, %v509_v53 }
  0x60   : > { %v511_v54 = vpop.eup %510 }
  0x61   : > { %446 = vst.msk [vmem:[%s228_s29 + $0x2] sm:$0x3] %vm262_vm0, %v511_v54 }
  0x62   : > { %v513_v55 = vpop.eup %512 }
  0x63   : > { %453 = vst.msk [vmem:[%s228_s29 + $0x4] sm:$0x3] %vm262_vm0, %v513_v55 }
  0x64 PF: > { %s15_s14 = sadd.s32 1, %s574_s14   ;;  %s696_s12 = smov %s570_s13 }
  0x65   : > { %p12_p4 = scmp.ge.s32.totalorder %s15_s14, 4   ;;  %s697_s13 = smov %s699_s16 }
  0x67   :  { %14 = sbr.rel (!%p12_p4) target bundleno = 3 (0x3), region = 76 }
  0x6e   :  { %344 = vsyncpa [#allocation3], 1 }
  0x6f   :  { %346 = vsyncpa [#allocation3 + $0x1], 1 }
  0x70   :  { %347 = vsyncpa [#allocation5], 1 }

</bundles_post_ra>
